<compile_context>
chip_gen: v6e
topology: v6e:2x2x1
jax: 0.10.0
libtpu: 0.0.40
codegen_flags: <defaults>
</compile_context>

<pallas_src>
import jax
import jax.numpy as jnp
from jax.experimental import pallas as pl
from jax.experimental.pallas import tpu as pltpu


def _bce_rows(logits, targets):
    # per-row numerically-stable BCE-with-logits terms (no reduction), matches
    # torch.nn.BCEWithLogitsLoss elementwise formulation.
    return (jnp.maximum(logits, 0.0) - logits * targets
            + jnp.log1p(jnp.exp(-jnp.abs(logits))))


def _make_kernel(batch, tb, tpc, has_padding):
    def kernel(data_ref, label_ref, w1_ref, b1_ref, w2s_ref, w2t_ref, bias_ref,
               base_out_ref, kd_out_ref, base_acc, kd_acc):
        c = pl.program_id(0)          # "core" axis (parallel)
        i = pl.program_id(1)          # batch-tile axis (arbitrary / reduction)
        nb = pl.num_programs(1)

        @pl.when(i == 0)
        def _init():
            base_acc[...] = jnp.zeros_like(base_acc)
            kd_acc[...] = jnp.zeros_like(kd_acc)

        x = data_ref[...].astype(jnp.float32)       # [TB, F] (may stream bf16 from HBM)
        y = label_ref[...].astype(jnp.float32)      # [TB, 1]

        # ---- fused student|teacher layer 1: one MXU matmul on the zero-padded
        #      concatenated weight [F, HP] (HP = round_up(H + HT, 128)) ----
        h = jnp.dot(x, w1_ref[...], preferred_element_type=jnp.float32) + b1_ref[...]
        h = jnp.maximum(h, 0.0)                     # [TB, HP]

        # ---- layer 2 (out_dim == 1) off the MXU: VPU multiply + XLU lane-reduce.
        #      w2s/w2t rows are zero-padded so each selects only its own tower. ----
        s_logit = jnp.sum(h * w2s_ref[...], axis=-1, keepdims=True) + bias_ref[0]  # [TB,1]
        t_logit = jnp.sum(h * w2t_ref[...], axis=-1, keepdims=True) + bias_ref[1]  # [TB,1]

        base_rows = _bce_rows(s_logit, y)                        # hard labels
        kd_rows = _bce_rows(s_logit, jax.nn.sigmoid(t_logit))    # teacher soft labels

        if has_padding:
            global_tile = c * tpc + i
            crosses = (global_tile + 1) * tb > batch

            @pl.when(jnp.logical_not(crosses))
            def _fast():
                base_acc[...] += base_rows
                kd_acc[...] += kd_rows

            @pl.when(crosses)
            def _masked():
                # keep this a SELECT (garbage rows may be NaN/Inf)
                row_ids = (jax.lax.broadcasted_iota(jnp.int32, (tb, 1), 0)
                           + global_tile * tb)
                valid = row_ids < batch
                base_acc[...] += jnp.where(valid, base_rows, 0.0)
                kd_acc[...] += jnp.where(valid, kd_rows, 0.0)
        else:
            base_acc[...] += base_rows
            kd_acc[...] += kd_rows

        @pl.when(i == nb - 1)
        def _finalize():
            base_out_ref[...] = jnp.broadcast_to(
                jnp.sum(base_acc[...], axis=0, keepdims=True), base_out_ref.shape)
            kd_out_ref[...] = jnp.broadcast_to(
                jnp.sum(kd_acc[...], axis=0, keepdims=True), kd_out_ref.shape)

    return kernel


def base_kd4ctr_forward(data, label, student_params, teacher_params, lmbda, *,
                        tb=1024, num_cores=2, data_dtype=jnp.bfloat16):
    """Returns (loss, base_loss, kd_loss); base/kd "detached" (no-op in this forward)."""
    w1, b1, w2, b2 = student_params          # (F,H), (1,H), (H,1), (1,1)
    wt1, bt1, wt2, bt2 = teacher_params      # (F,HT), (1,HT), (HT,1), (1,1)
    B, F = data.shape
    H, HT = w1.shape[1], wt1.shape[1]
    HP = ((H + HT + 127) // 128) * 128       # pad fused hidden width to lane multiple only

    f32 = jnp.float32
    # fused + zero-padded parameters (exact: padded columns contribute 0)
    w1_cat = jnp.zeros((F, HP), f32).at[:, :H].set(w1).at[:, H:H + HT].set(wt1)
    b1_cat = (jnp.zeros((1, HP), f32)
              .at[:, :H].set(jnp.reshape(b1, (1, H)))
              .at[:, H:H + HT].set(jnp.reshape(bt1, (1, HT))))
    w2s_row = jnp.zeros((1, HP), f32).at[:, :H].set(jnp.reshape(w2, (1, H)))
    w2t_row = jnp.zeros((1, HP), f32).at[:, H:H + HT].set(jnp.reshape(wt2, (1, HT)))
    biases = jnp.concatenate([jnp.asarray(b2, f32).reshape(1),
                              jnp.asarray(bt2, f32).reshape(1)])   # SMEM: [b2_s, b2_t]

    # ---- tile selection: multiple of 8, capped by B and by a 48 MiB VMEM budget
    #      (safe on v7x's 64 MiB as well as v5e/v6e's 128 MiB). ----
    tb = int(max(8, min(((tb + 7) // 8) * 8, ((B + 7) // 8) * 8)))
    stream_bytes = jnp.dtype(data_dtype).itemsize

    def _lane(n):
        return ((n + 127) // 128) * 128

    def _vmem_est(t):
        return (2 * t * _lane(F) * stream_bytes      # data (double-buffered)
                + 2 * t * _lane(1) * 4               # label (double-buffered)
                + F * HP * 4 + 3 * HP * 4            # resident weights
                + 2 * t * _lane(1) * 4               # per-row accumulators
                + 2 * 8 * 128 * 4)                   # output blocks

    while tb > 64 and _vmem_est(tb) > 48 * 1024 * 1024:
        tb = ((tb // 2 + 7) // 8) * 8
    vmem_limit = int(min(64 * 1024 * 1024, max(32 * 1024 * 1024, 2 * _vmem_est(tb))))

    tiles_total = pl.cdiv(B, tb)
    num_cores = 2 if (num_cores >= 2 and tiles_total >= 2) else 1
    tpc = pl.cdiv(tiles_total, num_cores)            # tiles per "core"
    clamp = (num_cores * tpc) > tiles_total          # odd tile count -> clamp block index
    has_padding = (num_cores * tpc * tb) != B        # any padded / duplicated rows

    def _batch_block(c, i):
        t = c * tpc + i
        if clamp:
            t = jnp.minimum(t, tiles_total - 1)      # duplicate tile; masked in kernel
        return t

    kernel = _make_kernel(B, tb, tpc, has_padding)

    out_shapes = (jax.ShapeDtypeStruct((num_cores * 8, 128), f32),   # per-core base sums
                  jax.ShapeDtypeStruct((num_cores * 8, 128), f32))   # per-core kd sums

    base_out, kd_out = pl.pallas_call(
        kernel,
        out_shape=out_shapes,
        grid=(num_cores, tpc),
        in_specs=[
            pl.BlockSpec((tb, F), lambda c, i: (_batch_block(c, i), 0)),   # data: streamed
            pl.BlockSpec((tb, 1), lambda c, i: (_batch_block(c, i), 0)),   # label: streamed
            pl.BlockSpec((F, HP), lambda c, i: (0, 0)),   # fused layer-1 weights: resident
            pl.BlockSpec((1, HP), lambda c, i: (0, 0)),   # fused layer-1 bias: resident
            pl.BlockSpec((1, HP), lambda c, i: (0, 0)),   # student layer-2 row: resident
            pl.BlockSpec((1, HP), lambda c, i: (0, 0)),   # teacher layer-2 row: resident
            pl.BlockSpec(memory_space=pltpu.MemorySpace.SMEM),  # [b2_s, b2_t]
        ],
        out_specs=(
            pl.BlockSpec((8, 128), lambda c, i: (c, 0)),
            pl.BlockSpec((8, 128), lambda c, i: (c, 0)),
        ),
        scratch_shapes=[pltpu.VMEM((tb, 1), f32),     # per-row running base BCE
                        pltpu.VMEM((tb, 1), f32)],    # per-row running KD BCE
        compiler_params=pltpu.CompilerParams(
            dimension_semantics=("parallel", "arbitrary"),
            vmem_limit_bytes=vmem_limit,
        ),
    )(data.astype(data_dtype), label.astype(f32),
      w1_cat, b1_cat, w2s_row, w2t_row, biases)

    # tiny combine in the wrapper (per review): mean over B, lmbda weighting.
    base_sum = jnp.sum(base_out.reshape(num_cores, 8, 128)[:, 0, 0])
    kd_sum = jnp.sum(kd_out.reshape(num_cores, 8, 128)[:, 0, 0])
    base_mean = base_sum / B
    kd_mean = kd_sum / B
    loss = base_mean + jnp.asarray(lmbda, f32) * kd_mean
    return loss, base_mean, kd_mean


def _reference(data, label, student_params, teacher_params, lmbda):
    w1, b1, w2, b2 = student_params
    wt1, bt1, wt2, bt2 = teacher_params

    def bce(logits, targets):
        return jnp.mean(jnp.maximum(logits, 0.0) - logits * targets
                        + jnp.log1p(jnp.exp(-jnp.abs(logits))))

    h = jnp.maximum(data @ w1 + b1, 0.0)
    s_logit = h @ w2 + b2
    ht = jnp.maximum(data @ wt1 + bt1, 0.0)
    t_logit = ht @ wt2 + bt2
    base = bce(s_logit, label)
    kd = bce(s_logit, jax.nn.sigmoid(t_logit))
    return base + lmbda * kd, base, kd


if __name__ == "__main__":
    key = jax.random.PRNGKey(0)
    F, H, HT = 32, 32, 64
    lmbda = 0.5

    k = jax.random.split(key, 10)
    # deterministic synthetic params (student)
    w1 = jax.random.normal(k[2], (F, H), jnp.float32) * 0.1
    b1 = jax.random.normal(k[3], (1, H), jnp.float32) * 0.01
    w2 = jax.random.normal(k[4], (H, 1), jnp.float32) * 0.1
    b2 = jax.random.normal(k[5], (1, 1), jnp.float32) * 0.01
    # deterministic synthetic params (frozen teacher)
    wt1 = jax.random.normal(k[6], (F, HT), jnp.float32) * 0.1
    bt1 = jax.random.normal(k[7], (1, HT), jnp.float32) * 0.01
    wt2 = jax.random.normal(k[8], (HT, 1), jnp.float32) * 0.1
    bt2 = jax.random.normal(k[9], (1, 1), jnp.float32) * 0.01
    student_params = (w1, b1, w2, b2)
    teacher_params = (wt1, bt1, wt2, bt2)

    # Run 1: f32 streaming, B divisible by tile -> unmasked fast path, 2-"core" grid.
    B1 = 256
    data1 = jax.random.normal(k[0], (B1, F), jnp.float32)
    label1 = (jax.random.uniform(k[1], (B1, 1)) > 0.5).astype(jnp.float32)
    out1 = base_kd4ctr_forward(data1, label1, student_params, teacher_params,
                               lmbda, tb=64, data_dtype=jnp.float32)
    jax.block_until_ready(out1)
    ref1 = _reference(data1, label1, student_params, teacher_params, lmbda)
    for a, b in zip(out1, ref1):
        assert jnp.allclose(a, b, atol=1e-5, rtol=1e-5), (a, b)

    # Run 2: bf16 data streaming + ragged batch -> masked-tail path exercised.
    B2 = 250
    data2 = jax.random.normal(k[0], (B2, F), jnp.float32)
    label2 = (jax.random.uniform(k[1], (B2, 1)) > 0.5).astype(jnp.float32)
    out2 = base_kd4ctr_forward(data2, label2, student_params, teacher_params,
                               lmbda, tb=64, data_dtype=jnp.bfloat16)
    jax.block_until_ready(out2)
    ref2 = _reference(data2, label2, student_params, teacher_params, lmbda)
    for a, b in zip(out2, ref2):
        assert jnp.allclose(a, b, atol=1e-2, rtol=1e-2), (a, b)

    print("KERNEL_OK")
</pallas_src>

<mosaic_0001>
module attributes {stable_mosaic.version = 11 : i64} {
  func.func @kernel(%arg0: i32, %arg1: i32, %arg2: memref<64x32xf32, #tpu.memory_space<vmem>>, %arg3: memref<64x1xf32, #tpu.memory_space<vmem>>, %arg4: memref<32x128xf32, #tpu.memory_space<vmem>>, %arg5: memref<1x128xf32, #tpu.memory_space<vmem>>, %arg6: memref<1x128xf32, #tpu.memory_space<vmem>>, %arg7: memref<1x128xf32, #tpu.memory_space<vmem>>, %arg8: memref<2xf32, #tpu.memory_space<smem>>, %arg9: memref<8x128xf32, #tpu.memory_space<vmem>>, %arg10: memref<8x128xf32, #tpu.memory_space<vmem>>, %arg11: memref<64x1xf32, #tpu.memory_space<vmem>>, %arg12: memref<64x1xf32, #tpu.memory_space<vmem>>) attributes {dimension_semantics = [#tpu.dimension_semantics<parallel>, #tpu.dimension_semantics<arbitrary>], iteration_bounds = array<i64: 2, 2>, scalar_prefetch = 0 : i64, scratch_operands = 2 : i64, tpu.core_type = #tpu.core_type<tc>, window_params = [{transform_indices = @transform_0, window_bounds = array<i64: 64, 32>}, {transform_indices = @transform_1, window_bounds = array<i64: 64, 1>}, {pipeline_mode = #tpu.pipeline_mode<synchronous>, transform_indices = @transform_2, window_bounds = array<i64: 32, 128>}, {pipeline_mode = #tpu.pipeline_mode<synchronous>, transform_indices = @transform_3, window_bounds = array<i64: 1, 128>}, {pipeline_mode = #tpu.pipeline_mode<synchronous>, transform_indices = @transform_4, window_bounds = array<i64: 1, 128>}, {pipeline_mode = #tpu.pipeline_mode<synchronous>, transform_indices = @transform_5, window_bounds = array<i64: 1, 128>}, {transform_indices = @transform_6, window_bounds = array<i64: 2>}, {transform_indices = @transform_7, window_bounds = array<i64: 8, 128>}, {transform_indices = @transform_8, window_bounds = array<i64: 8, 128>}]} {
    %c0_i32 = arith.constant 0 : i32
    %0 = arith.cmpi eq, %arg1, %c0_i32 : i32
    %1 = arith.extui %0 : i1 to i32
    %c0_i32_0 = arith.constant 0 : i32
    %2 = arith.cmpi ne, %1, %c0_i32_0 : i32
    scf.if %2 {
      %cst_30 = arith.constant 0.000000e+00 : f32
      %62 = vector.broadcast %cst_30 : f32 to vector<64x1xf32>
      %c0_31 = arith.constant 0 : index
      %c0_32 = arith.constant 0 : index
      %63 = vector.load %arg11[%c0_31, %c0_32] : memref<64x1xf32, #tpu.memory_space<vmem>>, vector<64x1xf32>
      tpu.vector_store %arg11[%c0_31, %c0_32], %62 {strides = array<i32>} : memref<64x1xf32, #tpu.memory_space<vmem>>, vector<64x1xf32>,
      %cst_33 = arith.constant 0.000000e+00 : f32
      %64 = vector.broadcast %cst_33 : f32 to vector<64x1xf32>
      %c0_34 = arith.constant 0 : index
      %c0_35 = arith.constant 0 : index
      %65 = vector.load %arg12[%c0_34, %c0_35] : memref<64x1xf32, #tpu.memory_space<vmem>>, vector<64x1xf32>
      tpu.vector_store %arg12[%c0_34, %c0_35], %64 {strides = array<i32>} : memref<64x1xf32, #tpu.memory_space<vmem>>, vector<64x1xf32>,
    } else {
    }
    %c0 = arith.constant 0 : index
    %c0_1 = arith.constant 0 : index
    %3 = vector.load %arg2[%c0, %c0_1] : memref<64x32xf32, #tpu.memory_space<vmem>>, vector<64x32xf32>
    %c0_2 = arith.constant 0 : index
    %c0_3 = arith.constant 0 : index
    %4 = vector.load %arg3[%c0_2, %c0_3] : memref<64x1xf32, #tpu.memory_space<vmem>>, vector<64x1xf32>
    %c0_4 = arith.constant 0 : index
    %c0_5 = arith.constant 0 : index
    %5 = vector.load %arg4[%c0_4, %c0_5] : memref<32x128xf32, #tpu.memory_space<vmem>>, vector<32x128xf32>
    %cst = arith.constant dense<0.000000e+00> : vector<64x128xf32>
    %6 = tpu.matmul %3, %5, %cst {dimension_numbers = #tpu.dot_dimension_numbers<[1], [0], [0], [1], [0, 0, 1, 1], [], []>} : vector<64x32xf32>, vector<32x128xf32>, vector<64x128xf32> -> vector<64x128xf32>
    %c0_6 = arith.constant 0 : index
    %c0_7 = arith.constant 0 : index
    %7 = vector.load %arg5[%c0_6, %c0_7] : memref<1x128xf32, #tpu.memory_space<vmem>>, vector<1x128xf32>
    %8 = vector.broadcast %7 : vector<1x128xf32> to vector<64x128xf32>
    %9 = arith.addf %6, %8 : vector<64x128xf32>
    %cst_8 = arith.constant 0.000000e+00 : f32
    %10 = vector.broadcast %cst_8 : f32 to vector<64x128xf32>
    %11 = arith.maximumf %9, %10 : vector<64x128xf32>
    %c0_9 = arith.constant 0 : index
    %c0_10 = arith.constant 0 : index
    %12 = vector.load %arg6[%c0_9, %c0_10] : memref<1x128xf32, #tpu.memory_space<vmem>>, vector<1x128xf32>
    %13 = vector.broadcast %12 : vector<1x128xf32> to vector<64x128xf32>
    %14 = arith.mulf %11, %13 : vector<64x128xf32>
    %cst_11 = arith.constant dense<0.000000e+00> : vector<64xf32>
    %15 = vector.multi_reduction <add>, %14, %cst_11 [1] : vector<64x128xf32> to vector<64xf32>
    %16 = vector.shape_cast %15 : vector<64xf32> to vector<64x1xf32>
    %c0_12 = arith.constant 0 : index
    %17 = memref.load %arg8[%c0_12] : memref<2xf32, #tpu.memory_space<smem>>
    %18 = vector.broadcast %17 : f32 to vector<64x1xf32>
    %19 = arith.addf %16, %18 : vector<64x1xf32>
    %c0_13 = arith.constant 0 : index
    %c0_14 = arith.constant 0 : index
    %20 = vector.load %arg7[%c0_13, %c0_14] : memref<1x128xf32, #tpu.memory_space<vmem>>, vector<1x128xf32>
    %21 = vector.broadcast %20 : vector<1x128xf32> to vector<64x128xf32>
    %22 = arith.mulf %11, %21 : vector<64x128xf32>
    %cst_15 = arith.constant dense<0.000000e+00> : vector<64xf32>
    %23 = vector.multi_reduction <add>, %22, %cst_15 [1] : vector<64x128xf32> to vector<64xf32>
    %24 = vector.shape_cast %23 : vector<64xf32> to vector<64x1xf32>
    %c1 = arith.constant 1 : index
    %25 = memref.load %arg8[%c1] : memref<2xf32, #tpu.memory_space<smem>>
    %26 = vector.broadcast %25 : f32 to vector<64x1xf32>
    %27 = arith.addf %24, %26 : vector<64x1xf32>
    %cst_16 = arith.constant 0.000000e+00 : f32
    %28 = vector.broadcast %cst_16 : f32 to vector<64x1xf32>
    %29 = arith.maximumf %19, %28 : vector<64x1xf32>
    %30 = arith.mulf %19, %4 : vector<64x1xf32>
    %31 = arith.subf %29, %30 : vector<64x1xf32>
    %32 = math.absf %19 : vector<64x1xf32>
    %cst_17 = arith.constant 0.000000e+00 : f32
    %33 = vector.broadcast %cst_17 : f32 to vector<64x1xf32>
    %34 = arith.subf %33, %32 : vector<64x1xf32>
    %35 = math.exp %34 : vector<64x1xf32>
    %36 = math.log1p %35 : vector<64x1xf32>
    %37 = arith.addf %31, %36 : vector<64x1xf32>
    %38 = arith.negf %27 : vector<64x1xf32>
    %39 = math.exp %38 : vector<64x1xf32>
    %cst_18 = arith.constant 1.000000e+00 : f32
    %40 = vector.broadcast %cst_18 : f32 to vector<64x1xf32>
    %41 = arith.addf %40, %39 : vector<64x1xf32>
    %42 = arith.divf %40, %41 : vector<64x1xf32>
    %cst_19 = arith.constant 0.000000e+00 : f32
    %43 = vector.broadcast %cst_19 : f32 to vector<64x1xf32>
    %44 = arith.maximumf %19, %43 : vector<64x1xf32>
    %45 = arith.mulf %19, %42 : vector<64x1xf32>
    %46 = arith.subf %44, %45 : vector<64x1xf32>
    %47 = math.absf %19 : vector<64x1xf32>
    %cst_20 = arith.constant 0.000000e+00 : f32
    %48 = vector.broadcast %cst_20 : f32 to vector<64x1xf32>
    %49 = arith.subf %48, %47 : vector<64x1xf32>
    %50 = math.exp %49 : vector<64x1xf32>
    %51 = math.log1p %50 : vector<64x1xf32>
    %52 = arith.addf %46, %51 : vector<64x1xf32>
    %c0_21 = arith.constant 0 : index
    %c0_22 = arith.constant 0 : index
    %53 = vector.load %arg11[%c0_21, %c0_22] : memref<64x1xf32, #tpu.memory_space<vmem>>, vector<64x1xf32>
    %54 = arith.addf %53, %37 : vector<64x1xf32>
    %c0_23 = arith.constant 0 : index
    %c0_24 = arith.constant 0 : index
    %55 = vector.load %arg11[%c0_23, %c0_24] : memref<64x1xf32, #tpu.memory_space<vmem>>, vector<64x1xf32>
    tpu.vector_store %arg11[%c0_23, %c0_24], %54 {strides = array<i32>} : memref<64x1xf32, #tpu.memory_space<vmem>>, vector<64x1xf32>,
    %c0_25 = arith.constant 0 : index
    %c0_26 = arith.constant 0 : index
    %56 = vector.load %arg12[%c0_25, %c0_26] : memref<64x1xf32, #tpu.memory_space<vmem>>, vector<64x1xf32>
    %57 = arith.addf %56, %52 : vector<64x1xf32>
    %c0_27 = arith.constant 0 : index
    %c0_28 = arith.constant 0 : index
    %58 = vector.load %arg12[%c0_27, %c0_28] : memref<64x1xf32, #tpu.memory_space<vmem>>, vector<64x1xf32>
    tpu.vector_store %arg12[%c0_27, %c0_28], %57 {strides = array<i32>} : memref<64x1xf32, #tpu.memory_space<vmem>>, vector<64x1xf32>,
    %c1_i32 = arith.constant 1 : i32
    %59 = arith.cmpi eq, %arg1, %c1_i32 : i32
    %60 = arith.extui %59 : i1 to i32
    %c0_i32_29 = arith.constant 0 : i32
    %61 = arith.cmpi ne, %60, %c0_i32_29 : i32
    scf.if %61 {
      %c0_30 = arith.constant 0 : index
      %c0_31 = arith.constant 0 : index
      %62 = vector.load %arg11[%c0_30, %c0_31] : memref<64x1xf32, #tpu.memory_space<vmem>>, vector<64x1xf32>
      %cst_32 = arith.constant dense<0.000000e+00> : vector<1xf32>
      %63 = vector.multi_reduction <add>, %62, %cst_32 [0] : vector<64x1xf32> to vector<1xf32>
      %64 = vector.shape_cast %63 : vector<1xf32> to vector<1x1xf32>
      %65 = vector.shape_cast %64 : vector<1x1xf32> to vector<1x1xf32>
      %66 = vector.broadcast %65 : vector<1x1xf32> to vector<8x128xf32>
      %c0_33 = arith.constant 0 : index
      %c0_34 = arith.constant 0 : index
      %67 = vector.load %arg9[%c0_33, %c0_34] : memref<8x128xf32, #tpu.memory_space<vmem>>, vector<8x128xf32>
      tpu.vector_store %arg9[%c0_33, %c0_34], %66 {strides = array<i32>} : memref<8x128xf32, #tpu.memory_space<vmem>>, vector<8x128xf32>,
      %c0_35 = arith.constant 0 : index
      %c0_36 = arith.constant 0 : index
      %68 = vector.load %arg12[%c0_35, %c0_36] : memref<64x1xf32, #tpu.memory_space<vmem>>, vector<64x1xf32>
      %cst_37 = arith.constant dense<0.000000e+00> : vector<1xf32>
      %69 = vector.multi_reduction <add>, %68, %cst_37 [0] : vector<64x1xf32> to vector<1xf32>
      %70 = vector.shape_cast %69 : vector<1xf32> to vector<1x1xf32>
      %71 = vector.shape_cast %70 : vector<1x1xf32> to vector<1x1xf32>
      %72 = vector.broadcast %71 : vector<1x1xf32> to vector<8x128xf32>
      %c0_38 = arith.constant 0 : index
      %c0_39 = arith.constant 0 : index
      %73 = vector.load %arg10[%c0_38, %c0_39] : memref<8x128xf32, #tpu.memory_space<vmem>>, vector<8x128xf32>
      tpu.vector_store %arg10[%c0_38, %c0_39], %72 {strides = array<i32>} : memref<8x128xf32, #tpu.memory_space<vmem>>, vector<8x128xf32>,
    } else {
    }
    return
  }
  func.func @transform_0(%arg0: i32, %arg1: i32) -> (i32, i32) {
    %c2_i32 = arith.constant 2 : i32
    %0 = arith.muli %arg0, %c2_i32 : i32
    %1 = arith.addi %0, %arg1 : i32
    %c0_i32 = arith.constant 0 : i32
    %c0_i32_0 = arith.constant 0 : i32
    return %1, %c0_i32 : i32, i32
  }
  func.func @transform_1(%arg0: i32, %arg1: i32) -> (i32, i32) {
    %c2_i32 = arith.constant 2 : i32
    %0 = arith.muli %arg0, %c2_i32 : i32
    %1 = arith.addi %0, %arg1 : i32
    %c0_i32 = arith.constant 0 : i32
    %c0_i32_0 = arith.constant 0 : i32
    return %1, %c0_i32 : i32, i32
  }
  func.func @transform_2(%arg0: i32, %arg1: i32) -> (i32, i32) {
    %c0_i32 = arith.constant 0 : i32
    %c0_i32_0 = arith.constant 0 : i32
    %c0_i32_1 = arith.constant 0 : i32
    return %c0_i32, %c0_i32_0 : i32, i32
  }
  func.func @transform_3(%arg0: i32, %arg1: i32) -> (i32, i32) {
    %c0_i32 = arith.constant 0 : i32
    %c0_i32_0 = arith.constant 0 : i32
    %c0_i32_1 = arith.constant 0 : i32
    return %c0_i32, %c0_i32_0 : i32, i32
  }
  func.func @transform_4(%arg0: i32, %arg1: i32) -> (i32, i32) {
    %c0_i32 = arith.constant 0 : i32
    %c0_i32_0 = arith.constant 0 : i32
    %c0_i32_1 = arith.constant 0 : i32
    return %c0_i32, %c0_i32_0 : i32, i32
  }
  func.func @transform_5(%arg0: i32, %arg1: i32) -> (i32, i32) {
    %c0_i32 = arith.constant 0 : i32
    %c0_i32_0 = arith.constant 0 : i32
    %c0_i32_1 = arith.constant 0 : i32
    return %c0_i32, %c0_i32_0 : i32, i32
  }
  func.func @transform_6(%arg0: i32, %arg1: i32) -> i32 {
    %c0_i32 = arith.constant 0 : i32
    %c0_i32_0 = arith.constant 0 : i32
    return %c0_i32 : i32
  }
  func.func @transform_7(%arg0: i32, %arg1: i32) -> (i32, i32) {
    %c0_i32 = arith.constant 0 : i32
    %c0_i32_0 = arith.constant 0 : i32
    return %arg0, %c0_i32 : i32, i32
  }
  func.func @transform_8(%arg0: i32, %arg1: i32) -> (i32, i32) {
    %c0_i32 = arith.constant 0 : i32
    %c0_i32_0 = arith.constant 0 : i32
    return %arg0, %c0_i32 : i32, i32
  }
}

</mosaic_0001>

<bundles_post_ra>
// kernel: tpu_custom_call.1
= control target key start
LH: loop header
LB: loop body
LE: loop exit
PB: predicated region body
PF: predicated region fallthrough
CT: control target
= control target key end

     0   :  { %s2034_s0 = inlined_call_operand.vmem [shape: f32[256,32], index: 0, kind: input, shape index: {}]   ;;  %s2035_s1 = inlined_call_operand.vmem [shape: f32[256,1], index: 1, kind: input, shape index: {}]   ;;  %s2036_s2 = inlined_call_operand.vmem [shape: f32[32,128], index: 2, kind: input, shape index: {}]   ;;  %s2037_s3 = inlined_call_operand.vmem [shape: f32[1,128], index: 3, kind: input, shape index: {}]   ;;  %s2038_s4 = inlined_call_operand.vmem [shape: f32[1,128], index: 4, kind: input, shape index: {}]   ;;  %s2039_s5 = inlined_call_operand.vmem [shape: f32[1,128], index: 5, kind: input, shape index: {}]   ;;  %s2040_s6 = inlined_call_operand.vmem [shape: f32[2], index: 6, kind: input, shape index: {}]   ;;  %s2041_s7 = inlined_call_operand.hbm [shape: f32[16,128], index: 7, kind: output, shape index: {0}]   ;;  %s2042_s8 = inlined_call_operand.hbm [shape: f32[16,128], index: 8, kind: output, shape index: {1}]  }
   0x1   :  { %2047 = sst [smem:[#allocation17_spill]] %s2040_s6 }
   0x2   :  { %14 = vsyncpa [#allocation6], 0 }
   0x3   :  { %15 = vsyncpa [#allocation5], 0 }
   0x4   :  { %17 = vsyncpa [#allocation5 + $0x1], 0 }
   0x5   :  { %18 = vsyncpa [#allocation9], 0 }
   0x6   :  { %20 = vsyncpa [#allocation9 + $0x1], 0  ;;  %s1584_s27 = smov 0   ;;  %s1586_s28 = smov 0  }
   0x7   :  { %s1588_s29 = smov 0   ;;  %s1590_s30 = smov 0  }
   0x8   :  { %s1592_s9 = smov 0   ;;  %s1594_s10 = smov 0  }
   0x9   :  { %s1596_s11 = smov 0   ;;  %s1598_s12 = smov 0  }
   0xa LB: > { %2048 = sst [smem:[#allocation13_spill]] %s1524_s10  ;;  %s1150_s13 = sadd.s32 4294967295, %s1532_s12   ;;  %s1532_s12 = sphi %s1598_s12, %s26_s12   ;;  %s1528_s11 = sphi %s1596_s11, %s2070_s11   ;;  %s1524_s10 = sphi %s1594_s10, %s2069_s10   ;;  %s1520_s9 = sphi %s1592_s9, %s2068_s9   ;;  %s1516_s30 = sphi %s1590_s30, %s2067_s30   ;;  %s1512_s29 = sphi %s1588_s29, %s2073_s29   ;;  %s1508_s28 = sphi %s1586_s28, %s2072_s28   ;;  %s1504_s27 = sphi %s1584_s27, %s2071_s27  }
   0xb   : > { %2049 = sst [smem:[#allocation14_spill]] %s1528_s11  ;;  %s1151_s14 = sadd.s32 4294967294, %s1532_s12  }
   0xc   : > { %s35_s15 = sadd.s32 1, %s1524_s10  ;;  %s38_s16 = sadd.s32 1, %s1528_s11 }
   0xd   : > { %p36_p0 = scmp.ge.s32.totalorder %s35_s15, 2  ;;  %s210_s17 = sadd.s32 1, %s1512_s29 }
   0xe   : > { %p220_p1 = scmp.ne.s32.totalorder %s1512_s29, %s1508_s28  ;;  %p221_p2 = scmp.eq.s32.totalorder %s1150_s13, 3 }
   0xf   : > { %s2075_s15 = smov (%p36_p0, %s35_s15), 0  ;;  %s2077_s16 = smov (!%p36_p0, %s38_s16), %s1528_s11 }
  0x10   : > { %2050 = sst [smem:[#allocation15_spill]] %s2075_s15  ;;  %p1634_p3 = por %p221_p2, %p220_p1 }
  0x11   : > { %p226_p4 = scmp.ne.s32.totalorder %s1508_s28, %s1504_s27  ;;  %p40_p5 = scmp.ge.s32.totalorder %s2077_s16, 2 }
  0x12   : > { %p227_p6 = scmp.eq.s32.totalorder %s1151_s14, 3  ;;  %p1156_p7 = scmp.ge.s32.totalorder %s1532_s12, 1 }
  0x13   : > { %p260_p8 = scmp.lt.s32.totalorder %s1532_s12, 5  ;;  %s2079_s16 = smov (%p40_p5, %s2077_s16), 0 }
  0x14   : > { %2052 = sst [smem:[#allocation16_spill]] %s2079_s16  ;;  %p1644_p9 = por %p227_p6, %p226_p4 }
  0x15   : > { %p1648_p10 = pnand %p1156_p7, %p260_p8  ;;  %s207_s21 = ssub.s32 %s1528_s11, %s2079_s16 }
  0x16   : > { %s2053_s19 = scalar_select %p1644_p9, 1, 0 }
  0x17   : > { %p208_p11 = scmp.eq.s32.totalorder %s207_s21, 0  ;;  %p1245_p12 = pneg %p1648_p10 }
  0x18   : > { %p1656_p13 = scmp.eq.s32.totalorder %s1150_s13, 0  ;;  %s2056_s6 = sld [smem:[#allocation17_spill]] }
  0x19   : > { %s1664_s26 = scalar_select %p208_p11, %s1512_s29, %s210_s17  }
  0x1a   : > { %p1246_p0 = pnand %p1656_p13, %p1245_p12 }
  0x1c   : > { %p1393_p2 = pneg %p1246_p0 }
  0x1e   : > { %s285_s25 = sshll.u32 %s2056_s6, 4  ;;  %s286_s25 = int_to_ptr.vmem [resolvable:$true] %s285_s25 }
  0x1f   : > { %s1391_s14 = scalar_lea.vmem %s286_s25, 16  ;;  %p1399_p6 = scmp.lt.s32.totalorder %s286_s25, %s286_s25 }
  0x20   : > { %p1392_p1 = scmp.ne.s32.totalorder %s286_s25, %s1391_s14  ;;  %p1400_p7 = scmp.lt.s32.totalorder %s1391_s14, %s1391_s14 }
  0x22   : > { %p1394_p4 = pnand %p1393_p2, %p1392_p1  ;;  %p1401_p8 = por %p1400_p7, %p1399_p6 }
  0x24   : > { %p1395_p5 = pneg %p1394_p4 }
  0x26   : > { %p1402_p9 = pnand %p1401_p8, %p1395_p5 }
  0x28   : > { %1405 = shalt.err (!%p1402_p9)
}
  0x29   : > { %s1534_s13 = smov [#allocation4]   ;;  %324 = sbr.rel (%p1648_p10) target bundleno = 700 (0x2bc), region = 48 }
  0x2a   : > { %1248 = dma.vmem_to_smem (!%p1246_p0), %s286_s25, 16, %s1534_s13, [#allocation6]  }
  0x2e   : > { %1491 = dma.done.wait (%p1656_p13), [#allocation6], 16  }
  0x2f   : > { %1493 = vsyncadd (%p1656_p13), [#allocation6], 4294967280 }
  0x30   : > { %330 = sfence }
  0x31   : > { %s1675_s17 = sand.u32 1, %s1508_s28   ;;  %s1163_s21 = sshll.u32 %s1520_s9, 1 }
  0x32   : > { %s1161_s23 = sshll.u32 %s1675_s17, 3  ;;  %s374_s24 = sadd.s32 %s1516_s30, %s1163_s21 }
  0x33   : > { %s1164_s25 = sshll.u32 %s374_s24, 3  ;;  %s1690_s11 = scalar_lea.vmem [#allocation7], %s1161_s23 }
  0x34   : > { %p376_p9 = scmp.lt.s32.totalorder %s1164_s25, 31  ;;  %s1692_s10 = scalar_lea.vmem [#allocation8], %s1161_s23 }
  0x35   : > { %p1169_p10 = scmp.ne.s32.totalorder %s1516_s30, 0 }
  0x36   : > { %s2081_s25 = smov (!%p376_p9, %s1164_s25), 31 }
  0x37   : > { %s1165_s20 = sshll.u32 %s2081_s25, 3  ;;  %396 = sbr.rel (%p1169_p10) target bundleno = 69 (0x45), region = 56 }
  0x38   : > { %s1683_s6 = scalar_lea.vmem %s2034_s0, %s1165_s20  ;;  %s1688_s15 = scalar_lea.vmem %s2035_s1, %s1165_s20 }
  0x3c   : > { %vm397_vm0 = vcmask 7168   ;;  %v1535_v0 = vmov 0.0  }
  0x3d   : > { %398 = vst.msk [vmem:[#allocation2] sm:$0xff] %vm397_vm0, %v1535_v0  ;;  %399 = vst.msk [vmem:[#allocation2 + $0x8] sm:$0xff] %vm397_vm0, %v1535_v0 }
  0x3e   : > { %400 = vst.msk [vmem:[#allocation2 + $0x10] sm:$0xff] %vm397_vm0, %v1535_v0  ;;  %401 = vst.msk [vmem:[#allocation2 + $0x18] sm:$0xff] %vm397_vm0, %v1535_v0 }
  0x3f   : > { %402 = vst.msk [vmem:[#allocation2 + $0x20] sm:$0xff] %vm397_vm0, %v1535_v0  ;;  %403 = vst.msk [vmem:[#allocation2 + $0x28] sm:$0xff] %vm397_vm0, %v1535_v0 }
  0x40   : > { %404 = vst.msk [vmem:[#allocation2 + $0x30] sm:$0xff] %vm397_vm0, %v1535_v0  ;;  %405 = vst.msk [vmem:[#allocation2 + $0x38] sm:$0xff] %vm397_vm0, %v1535_v0 }
  0x41   : > { %406 = vst.msk [vmem:[#allocation3] sm:$0xff] %vm397_vm0, %v1535_v0  ;;  %407 = vst.msk [vmem:[#allocation3 + $0x8] sm:$0xff] %vm397_vm0, %v1535_v0 }
  0x42   : > { %408 = vst.msk [vmem:[#allocation3 + $0x10] sm:$0xff] %vm397_vm0, %v1535_v0  ;;  %409 = vst.msk [vmem:[#allocation3 + $0x18] sm:$0xff] %vm397_vm0, %v1535_v0 }
  0x43   : > { %410 = vst.msk [vmem:[#allocation3 + $0x20] sm:$0xff] %vm397_vm0, %v1535_v0  ;;  %411 = vst.msk [vmem:[#allocation3 + $0x28] sm:$0xff] %vm397_vm0, %v1535_v0 }
  0x44   : > { %412 = vst.msk [vmem:[#allocation3 + $0x30] sm:$0xff] %vm397_vm0, %v1535_v0  ;;  %413 = vst.msk [vmem:[#allocation3 + $0x38] sm:$0xff] %vm397_vm0, %v1535_v0 }
  0x45 PF: > { %v433_v1 = vld [vmem:[%s2036_s2 + $0x18] sm:$0xff]  ;;  %v432_v2 = vld [vmem:[%s2036_s2 + $0x10] sm:$0xff]  ;;  %v431_v3 = vld [vmem:[%s2036_s2 + $0x8] sm:$0xff]  ;;  %vm441_vm1 = vcmask 261120   ;;  %s610_s25 = sld [smem:[#allocation4]]  ;;  %vm885_vm2 = vcmask 7168  }
  0x46   : > { %1209 = vmatprep.subr.mxu0 %v433_v1  ;;  %1229 = vmatprep.subr.mxu1 %v433_v1  ;;  %v430_v4 = vld [vmem:[%s2036_s2] sm:$0xff]  ;;  %v415_v7 = vld [vmem:[%s1683_s6 + $0x8] sm:$0xff]  ;;  %v416_v9 = vld [vmem:[%s1683_s6 + $0x10] sm:$0xff]  ;;  %s1181_s20 = sld [smem:[#allocation4 + $0x1]]  ;;  %p1190_p11 = scmp.ne.s32.totalorder %s1516_s30, 1 }
  0x47   : > { %1210 = vmatpush3.msra.mxu0 %v433_v1  ;;  %1233 = vmatpush3.msra.mxu1 %v433_v1  ;;  %v414_v5 = vld [vmem:[%s1683_s6] sm:$0xff]  ;;  %v419_v8 = vld [vmem:[%s1683_s6 + $0x28] sm:$0xff]  ;;  %v420_v10 = vld [vmem:[%s1683_s6 + $0x30] sm:$0xff] }
  0x48   : > { %1211 = vmatprep.subr.mxu0 %v432_v2  ;;  %1230 = vmatprep.subr.mxu1 %v432_v2  ;;  %v418_v6 = vld [vmem:[%s1683_s6 + $0x20] sm:$0xff]  ;;  %v417_v11 = vld [vmem:[%s1683_s6 + $0x18] sm:$0xff] }
  0x49   : > { %1212 = vmatpush3.msra.mxu0 %v432_v2  ;;  %1234 = vmatpush3.msra.mxu1 %v432_v2  ;;  %v421_v12 = vld [vmem:[%s1683_s6 + $0x38] sm:$0xff]  ;;  %v1170_v13 = vld [vmem:[%s2037_s3] ss:$0 sm:$0xff] }
  0x4a   : > { %1213 = vmatprep.subr.mxu0 %v431_v3  ;;  %1231 = vmatprep.subr.mxu1 %v431_v3  ;;  %v1179_v20 = vld [vmem:[%s2038_s4] ss:$0 sm:$0xff] }
  0x4b   : > { %1214 = vmatpush3.msra.mxu0 %v431_v3  ;;  %1235 = vmatpush3.msra.mxu1 %v431_v3  ;;  %v1180_v29 = vld [vmem:[%s2039_s5] ss:$0 sm:$0xff]  ;;  %v1748_v56 = vstv %s610_s25 }
  0x4c   : > { %1215 = vmatprep.subr.mxu0 %v430_v4  ;;  %1232 = vmatprep.subr.mxu1 %v430_v4  ;;  %v1756_v61 = vstv %s1181_s20 }
  0x4d   : > { %1216 = vmatpush3.msra.mxu0 %v430_v4  ;;  %1236 = vmatpush3.msra.mxu1 %v430_v4 }
  0x4e   : > { %1217 = vmatprep.mubr.msk.f32.mxu0 %vm441_vm1, %v414_v5  ;;  %1223 = vmatprep.mubr.msk.f32.mxu1 %vm441_vm1, %v418_v6 }
  0x4f   : > { %1218 = vmatmul.mubr.msk.f32.vlgmr.msra.gmra.mxu0 %vm441_vm1, %v415_v7  ;;  %1224 = vmatmul.mubr.msk.f32.vlgmr.msra.gmra.mxu1 %vm441_vm1, %v419_v8 }
  0x50   : > { %1220 = vmatprep.mubr.msk.f32.mxu0 %vm441_vm1, %v416_v9  ;;  %1226 = vmatprep.mubr.msk.f32.mxu1 %vm441_vm1, %v420_v10 }
  0x53   : > { %1221 = vmatmul.mubr.msk.f32.gmra.mxu0 %vm441_vm1, %v417_v11  ;;  %1227 = vmatmul.mubr.msk.f32.gmra.mxu1 %vm441_vm1, %v421_v12 }
 0x10f   : > { %v1219_v14 = vpop.f32.mrf.mxu0  ;;  %v1225_v15 = vpop.f32.mrf.mxu1 }
 0x110   : > { %v538_v16 = vadd.f32 %v1219_v14, %v1170_v13  ;;  %v558_v17 = vadd.f32 %v1225_v15, %v1170_v13 }
 0x111   : > { %v532_v18 = vpop.f32.mrf.mxu0  ;;  %v552_v19 = vpop.f32.mrf.mxu1 }
 0x112   : > { %v572_v21 = vmax.f32 %v538_v16, 0.0  ;;  %v576_v22 = vmax.f32 %v558_v17, 0.0  ;;  %v533_v23 = vadd.f32 %v1170_v13, %v532_v18  ;;  %v553_v25 = vadd.f32 %v1170_v13, %v552_v19 }
 0x113   : > { %v1222_v28 = vpop.f32.mrf.mxu0  ;;  %v1228_v34 = vpop.f32.mrf.mxu1 }
 0x114   : > { %v571_v24 = vmax.f32 %v533_v23, 0.0  ;;  %v591_v26 = vmul.f32 %v1179_v20, %v576_v22  ;;  %v587_v27 = vmul.f32 %v1179_v20, %v572_v21  ;;  %v548_v30 = vadd.f32 %v1222_v28, %v1170_v13 }
 0x115   : > { %v575_v31 = vmax.f32 %v553_v25, 0.0  ;;  %v628_v32 = vmul.f32 %v1180_v29, %v572_v21  ;;  %v568_v36 = vadd.f32 %v1228_v34, %v1170_v13  ;;  %v632_v37 = vmul.f32 %v1180_v29, %v576_v22  ;;  %v562_v39 = vpop.f32.mrf.mxu1  ;;  %v542_v44 = vpop.f32.mrf.mxu0 }
 0x116   : > { %604 = vadd.xlane.f32.xlu1 %v591_v26  ;;  %596 = vadd.xlane.f32.xlu0 %v587_v27  ;;  %v586_v33 = vmul.f32 %v1179_v20, %v571_v24  ;;  %v574_v35 = vmax.f32 %v548_v30, 0.0  ;;  %v563_v42 = vadd.f32 %v1170_v13, %v562_v39  ;;  %v627_v43 = vmul.f32 %v1180_v29, %v571_v24 }
 0x117   : > { %v590_v38 = vmul.f32 %v1179_v20, %v575_v31  ;;  %v578_v40 = vmax.f32 %v568_v36, 0.0  ;;  %v543_v46 = vadd.f32 %v1170_v13, %v542_v44  ;;  %v631_v48 = vmul.f32 %v1180_v29, %v575_v31  ;;  %v423_v36 = vld [vmem:[%s1688_s15 + $0x8] sm:$0xff] }
 0x118   : > { %v589_v41 = vmul.f32 %v1179_v20, %v574_v35  ;;  %v577_v47 = vmax.f32 %v563_v42, 0.0  ;;  %v630_v50 = vmul.f32 %v1180_v29, %v574_v35 }
 0x119   : > { %v593_v45 = vmul.f32 %v1179_v20, %v578_v40  ;;  %v573_v49 = vmax.f32 %v543_v46, 0.0  ;;  %v634_v54 = vmul.f32 %v1180_v29, %v578_v40 }
 0x11a   : > { %637 = vadd.xlane.f32.xlu1 %v628_v32  ;;  %594 = vadd.xlane.f32.xlu0 %v586_v33  ;;  %v592_v51 = vmul.f32 %v1179_v20, %v577_v47  ;;  %v633_v55 = vmul.f32 %v1180_v29, %v577_v47  ;;  %v427_v33 = vld [vmem:[%s1688_s15 + $0x28] sm:$0xff] }
 0x11b   : > { %v588_v52 = vmul.f32 %v1179_v20, %v573_v49  ;;  %v629_v53 = vmul.f32 %v1180_v29, %v573_v49 }
 0x11e   : > { %645 = vadd.xlane.f32.xlu1 %v632_v37  ;;  %602 = vadd.xlane.f32.xlu0 %v590_v38  ;;  %v422_v37 = vld [vmem:[%s1688_s15] sm:$0xff] }
 0x122   : > { %600 = vadd.xlane.f32.xlu1 %v589_v41  ;;  %635 = vadd.xlane.f32.xlu0 %v627_v43 }
 0x126   : > { %608 = vadd.xlane.f32.xlu1 %v593_v45  ;;  %643 = vadd.xlane.f32.xlu0 %v631_v48 }
 0x12a   : > { %641 = vadd.xlane.f32.xlu1 %v630_v50  ;;  %606 = vadd.xlane.f32.xlu0 %v592_v51 }
 0x12e   : > { %598 = vadd.xlane.f32.xlu1 %v588_v52  ;;  %639 = vadd.xlane.f32.xlu0 %v629_v53 }
 0x132   : > { %649 = vadd.xlane.f32.xlu1 %v634_v54  ;;  %647 = vadd.xlane.f32.xlu0 %v633_v55 }
 0x19f   : > { %v605_v57 = vpop.xlane.xlu1 %604  ;;  %v597_v58 = vpop.xlane.xlu0 %596 }
 0x1a0   : > { %v1751_v59 = vadd.f32 %v1748_v56, %v605_v57  ;;  %v1754_v60 = vadd.f32 %v1748_v56, %v597_v58 }
 0x1a2   : > { %v690_v62 = vand.u32 2147483647, %v1751_v59  ;;  %v686_v63 = vand.u32 2147483647, %v1754_v60  ;;  %v666_v39 = vmax.f32 %v1751_v59, 0.0  ;;  %v674_v42 = vmul.f32 %v1751_v59, %v427_v33 }
 0x1a3   : > { %v638_v0 = vpop.xlane.xlu1 %637  ;;  %v595_v1 = vpop.xlane.xlu0 %594  ;;  %v662_v44 = vmax.f32 %v1754_v60, 0.0  ;;  %v670_v47 = vmul.f32 %v1754_v60, %v423_v36 }
 0x1a4   : > { %v698_v2 = vsub.f32 0.0, %v690_v62  ;;  %v654_v3 = vadd.f32 %v1756_v61, %v638_v0  ;;  %v1762_v4 = vadd.f32 %v1748_v56, %v595_v1  ;;  %v694_v5 = vsub.f32 0.0, %v686_v63  ;;  %v426_v63 = vld [vmem:[%s1688_s15 + $0x20] sm:$0xff] }
 0x1a5   : > { %v1803_v58 = vsub.f32 %v666_v39, %v674_v42 }
 0x1a6   : > { %v711_v6 = vmul.f32 1.442695, %v698_v2  ;;  %v1183_v7 = vmul.f32 -1.442695, %v654_v3  ;;  %v703_v8 = vmul.f32 1.442695, %v694_v5  ;;  %v669_v50 = vmul.f32 %v1762_v4, %v422_v37 }
 0x1a7   : > { %v685_v9 = vand.u32 2147483647, %v1762_v4  ;;  %v646_v10 = vpop.xlane.xlu1 %645  ;;  %v603_v11 = vpop.xlane.xlu0 %602  ;;  %v661_v49 = vmax.f32 %v1762_v4, 0.0  ;;  %v1809_v2 = vsub.f32 %v662_v44, %v670_v47 }
 0x1a8   : > { %1326 = vpow2.f32 %v711_v6  ;;  %v658_v12 = vadd.f32 %v1756_v61, %v646_v10  ;;  %v1767_v13 = vadd.f32 %v1748_v56, %v603_v11 }
 0x1a9   : > { %1328 = vpow2.f32 %v703_v8  ;;  %v693_v14 = vsub.f32 0.0, %v685_v9  ;;  %v1813_v3 = vsub.f32 %v661_v49, %v669_v50 }
 0x1aa   : > { %1330 = vpow2.f32 %v1183_v7  ;;  %v1187_v15 = vmul.f32 -1.442695, %v658_v12  ;;  %v689_v17 = vand.u32 2147483647, %v1767_v13  ;;  %v665_v7 = vmax.f32 %v1767_v13, 0.0 }
 0x1ab   : > { %v701_v16 = vmul.f32 1.442695, %v693_v14  ;;  %v601_v18 = vpop.xlane.xlu1 %600  ;;  %v636_v19 = vpop.xlane.xlu0 %635  ;;  %v673_v12 = vmul.f32 %v1767_v13, %v426_v63 }
 0x1ac   : > { %1332 = vpow2.f32 %v1187_v15  ;;  %v1771_v20 = vadd.f32 %v1748_v56, %v601_v18  ;;  %v653_v21 = vadd.f32 %v1756_v61, %v636_v19  ;;  %v697_v22 = vsub.f32 0.0, %v689_v17 }
 0x1ad   : > { %1334 = vpow2.f32 %v701_v16 }
 0x1ae   : > { %v688_v23 = vand.u32 2147483647, %v1771_v20  ;;  %v1182_v24 = vmul.f32 -1.442695, %v653_v21  ;;  %v709_v25 = vmul.f32 1.442695, %v697_v22 }
 0x1af   : > { %v609_v26 = vpop.xlane.xlu1 %608  ;;  %v644_v27 = vpop.xlane.xlu0 %643 }
 0x1b0   : > { %v696_v28 = vsub.f32 0.0, %v688_v23  ;;  %1336 = vpow2.f32 %v1182_v24  ;;  %v1776_v29 = vadd.f32 %v1748_v56, %v609_v26  ;;  %v657_v30 = vadd.f32 %v1756_v61, %v644_v27 }
 0x1b1   : > { %1338 = vpow2.f32 %v709_v25 }
 0x1b2   : > { %v707_v31 = vmul.f32 1.442695, %v696_v28  ;;  %v692_v32 = vand.u32 2147483647, %v1776_v29  ;;  %v1186_v34 = vmul.f32 -1.442695, %v657_v30  ;;  %v1836_v28 = vsub.f32 %v665_v7, %v673_v12 }
 0x1b3   : > { %v642_v35 = vpop.xlane.xlu1 %641  ;;  %v607_v40 = vpop.xlane.xlu0 %606  ;;  %v664_v30 = vmax.f32 %v1771_v20, 0.0 }
 0x1b4   : > { %1340 = vpow2.f32 %v707_v31  ;;  %v700_v45 = vsub.f32 0.0, %v692_v32  ;;  %v1796_v52 = vadd.f32 %v1748_v56, %v607_v40  ;;  %v656_v54 = vadd.f32 %v1756_v61, %v642_v35 }
 0x1b5   : > { %v1783_v38 = vpop.eup %1326  ;;  %1342 = vpow2.f32 %v1186_v34 }
 0x1b6   : > { %v1786_v41 = vpop.eup %1328  ;;  %v762_v43 = vadd.f32 1.0, %v1783_v38  ;;  %v715_v0 = vmul.f32 1.442695, %v700_v45  ;;  %v765_v1 = vmul.f32 -0.5, %v1783_v38  ;;  %v691_v8 = vand.u32 2147483647, %v1796_v52 }
 0x1b7   : > { %v1331_v46 = vpop.eup %1330  ;;  %v726_v48 = vadd.f32 1.0, %v1786_v41  ;;  %v599_v55 = vpop.xlane.xlu1 %598  ;;  %v768_v11 = vand.u32 2147483647, %v1783_v38  ;;  %v1185_v14 = vmul.f32 -1.442695, %v656_v54  ;;  %v729_v21 = vmul.f32 -0.5, %v1786_v41 }
 0x1b8   : > { %1344 = vlog2.f32 %v762_v43  ;;  %v822_v51 = vadd.f32 1.0, %v1331_v46  ;;  %v640_v6 = vpop.xlane.xlu0 %639  ;;  %v1819_v9 = vadd.f32 %v1748_v56, %v599_v55  ;;  %v699_v17 = vsub.f32 0.0, %v691_v8 }
 0x1b9   : > { %v1333_v53 = vpop.eup %1332  ;;  %1346 = vlog2.f32 %v726_v48  ;;  %v655_v18 = vadd.f32 %v1756_v61, %v640_v6  ;;  %v766_v19 = vadd.f32 1.0, %v765_v1  ;;  %v732_v56 = vand.u32 2147483647, %v1786_v41  ;;  %v874_v6 = vld [vmem:[#allocation2 + $0x28] sm:$0xff] }
 0x1ba   : > { %v1799_v57 = vpop.eup %1334  ;;  %1348 = vrcp.f32 %v822_v51  ;;  %v826_v62 = vadd.f32 1.0, %v1333_v53  ;;  %v713_v24 = vmul.f32 1.442695, %v699_v17  ;;  %v687_v25 = vand.u32 2147483647, %v1819_v9 }
 0x1bb   : > { %v717_v5 = vadd.f32 1.0, %v1799_v57  ;;  %v720_v23 = vmul.f32 -0.5, %v1799_v57  ;;  %v723_v27 = vand.u32 2147483647, %v1799_v57  ;;  %vm1839_vm3 = vcmp.lt.f32.partialorder %v768_v11, 0.0004427343  ;;  %v650_v35 = vpop.xlane.xlu1 %649 }
 0x1bc   : > { %1350 = vrcp.f32 %v826_v62  ;;  %v1184_v34 = vmul.f32 -1.442695, %v655_v18  ;;  %v648_v36 = vpop.xlane.xlu0 %647  ;;  %v730_v37 = vadd.f32 1.0, %v729_v21  ;;  %vm1844_vm4 = vcmp.lt.f32.partialorder %v732_v56, 0.0004427343  ;;  %v425_v56 = vld [vmem:[%s1688_s15 + $0x18] sm:$0xff] }
 0x1bd   : > { %v1337_v10 = vpop.eup %1336  ;;  %1352 = vlog2.f32 %v717_v5  ;;  %v767_v43 = vmul.f32 %v1783_v38, %v766_v19  ;;  %v721_v45 = vadd.f32 1.0, %v720_v23  ;;  %v695_v46 = vsub.f32 0.0, %v687_v25  ;;  %v895_v23 = vld [vmem:[#allocation3 + $0x8] sm:$0xff] }
 0x1be   : > { %v1823_v15 = vpop.eup %1338  ;;  %v821_v16 = vadd.f32 1.0, %v1337_v10  ;;  %1354 = vpow2.f32 %v715_v0  ;;  %vm1849_vm5 = vcmp.lt.f32.partialorder %v723_v27, 0.0004427343  ;;  %v660_v50 = vadd.f32 %v1756_v61, %v650_v35  ;;  %v899_v35 = vld [vmem:[#allocation3 + $0x28] sm:$0xff] }
 0x1bf   : > { %v753_v22 = vadd.f32 1.0, %v1823_v15  ;;  %v659_v51 = vadd.f32 %v1756_v61, %v648_v36  ;;  %v756_v55 = vmul.f32 -0.5, %v1823_v15  ;;  %v705_v62 = vmul.f32 1.442695, %v695_v46 }
 0x1c0   : > { %1356 = vrcp.f32 %v821_v16  ;;  %v731_v0 = vmul.f32 %v1786_v41, %v730_v37  ;;  %v1189_v1 = vmul.f32 -1.442695, %v660_v50  ;;  %v759_v61 = vand.u32 2147483647, %v1823_v15 }
 0x1c1   : > { %v1831_v26 = vpop.eup %1340  ;;  %1358 = vlog2.f32 %v753_v22  ;;  %v1188_v5 = vmul.f32 -1.442695, %v659_v51  ;;  %v722_v25 = vmul.f32 %v1799_v57, %v721_v45  ;;  %v757_v27 = vadd.f32 1.0, %v756_v55 }
 0x1c2   : > { %v1343_v31 = vpop.eup %1342  ;;  %v744_v33 = vadd.f32 1.0, %v1831_v26  ;;  %1360 = vpow2.f32 %v1185_v14  ;;  %v870_v14 = vld [vmem:[#allocation2 + $0x8] sm:$0xff]  ;;  %v747_v41 = vmul.f32 -0.5, %v1831_v26  ;;  %vm1879_vm6 = vcmp.lt.f32.partialorder %v759_v61, 0.0004427343  ;;  %v872_v61 = vld [vmem:[#allocation2 + $0x18] sm:$0xff] }
 0x1c3   : > { %v825_v42 = vadd.f32 1.0, %v1343_v31  ;;  %1362 = vpow2.f32 %v713_v24  ;;  %v672_v57 = vmul.f32 %v1771_v20, %v425_v56  ;;  %v750_v48 = vand.u32 2147483647, %v1831_v26 }
 0x1c4   : > { %1364 = vlog2.f32 %v744_v33  ;;  %v869_v33 = vld [vmem:[#allocation2] sm:$0xff]  ;;  %v748_v37 = vadd.f32 1.0, %v747_v41 }
 0x1c5   : > { %v1345_v47 = vpop.eup %1344  ;;  %1366 = vrcp.f32 %v825_v42  ;;  %vm751_vm7 = vcmp.lt.f32.partialorder %v750_v48, 0.0004427343 }
 0x1c6   : > { %v1347_v53 = vpop.eup %1346  ;;  %v764_v54 = vmul.f32 0.6931472, %v1345_v47  ;;  %1368 = vpow2.f32 %v1184_v34  ;;  %v758_v47 = vmul.f32 %v1823_v15, %v757_v27  ;;  %v749_v15 = vmul.f32 %v1831_v26, %v748_v37 }
 0x1c7   : > { %v1349_v38 = vpop.eup %1348  ;;  %v728_v63 = vmul.f32 0.6931472, %v1347_v53  ;;  %1370 = vpow2.f32 %v705_v62  ;;  %v873_v62 = vld [vmem:[#allocation2 + $0x20] sm:$0xff] }
 0x1c8   : > { %v770_v8 = vsel %vm1839_vm3, %v767_v43, %v764_v54  ;;  %v846_v10 = vmul.f32 %v1349_v38, %v1754_v60  ;;  %1372 = vpow2.f32 %v1189_v1 }
 0x1c9   : > { %v1351_v11 = vpop.eup %1350  ;;  %v794_v12 = vadd.f32 %v770_v8, %v1803_v58  ;;  %v734_v16 = vsel %vm1844_vm4, %v731_v0, %v728_v63  ;;  %1374 = vpow2.f32 %v1188_v5  ;;  %v894_v63 = vld [vmem:[#allocation3] sm:$0xff] }
 0x1ca   : > { %v1353_v17 = vpop.eup %1352  ;;  %v790_v18 = vadd.f32 %v734_v16, %v1809_v2  ;;  %v854_v19 = vsub.f32 %v662_v44, %v846_v10  ;;  %v850_v21 = vmul.f32 %v1351_v11, %v1751_v59 }
 0x1cb   : > { %v1870_v22 = vpop.eup %1354  ;;  %v882_v58 = vadd.f32 %v874_v6, %v794_v12  ;;  %v719_v24 = vmul.f32 0.6931472, %v1353_v17 }
 0x1cc   : > { %v878_v31 = vadd.f32 %v870_v14, %v790_v18  ;;  %v862_v32 = vadd.f32 %v854_v19, %v734_v16  ;;  %v858_v2 = vsub.f32 %v666_v39, %v850_v21  ;;  %v780_v60 = vadd.f32 1.0, %v1870_v22  ;;  %v898_v19 = vld [vmem:[#allocation3 + $0x20] sm:$0xff] }
 0x1cd   : > { %v1357_v44 = vpop.eup %1356  ;;  %891 = vst.msk [vmem:[#allocation2 + $0x28] sm:$0xff] %vm885_vm2, %v882_v58  ;;  %v725_v34 = vsel %vm1849_vm5, %v722_v25, %v719_v24  ;;  %v783_v41 = vmul.f32 -0.5, %v1870_v22 }
 0x1ce   : > { %v1359_v40 = vpop.eup %1358  ;;  %887 = vst.msk [vmem:[#allocation2 + $0x8] sm:$0xff] %vm885_vm2, %v878_v31  ;;  %v903_v59 = vadd.f32 %v895_v23, %v862_v32  ;;  %v789_v39 = vadd.f32 %v725_v34, %v1813_v3  ;;  %v866_v42 = vadd.f32 %v858_v2, %v770_v8  ;;  %v845_v43 = vmul.f32 %v1357_v44, %v1762_v4  ;;  %v429_v23 = vld [vmem:[%s1688_s15 + $0x38] sm:$0xff]  ;;  %v428_v44 = vld [vmem:[%s1688_s15 + $0x30] sm:$0xff] }
 0x1cf   : > { %v1361_v45 = vpop.eup %1360  ;;  %v755_v46 = vmul.f32 0.6931472, %v1359_v40  ;;  %1376 = vlog2.f32 %v780_v60  ;;  %v680_v8 = vsub.f32 %v664_v30, %v672_v57  ;;  %v668_v32 = vmax.f32 %v1776_v29, 0.0 }
 0x1d0   : > { %v1889_v50 = vpop.eup %1362  ;;  %911 = vst.msk [vmem:[#allocation3 + $0x8] sm:$0xff] %vm885_vm2, %v903_v59  ;;  %v877_v51 = vadd.f32 %v869_v33, %v789_v39  ;;  %v907_v53 = vadd.f32 %v899_v35, %v866_v42  ;;  %v853_v54 = vsub.f32 %v661_v49, %v845_v43  ;;  %v824_v3 = vadd.f32 1.0, %v1361_v45  ;;  %v876_v43 = vld [vmem:[#allocation2 + $0x38] sm:$0xff] }
 0x1d1   : > { %v1365_v55 = vpop.eup %1364  ;;  %v761_v38 = vsel %vm1879_vm6, %v758_v47, %v755_v46  ;;  %v771_v0 = vadd.f32 1.0, %v1889_v50  ;;  %v774_v31 = vmul.f32 -0.5, %v1889_v50  ;;  %v676_v2 = vmul.f32 %v1776_v29, %v429_v23 }
 0x1d2   : > { %v1367_v1 = vpop.eup %1366  ;;  %886 = vst.msk [vmem:[#allocation2] sm:$0xff] %vm885_vm2, %v877_v51  ;;  %915 = vst.msk [vmem:[#allocation3 + $0x28] sm:$0xff] %vm885_vm2, %v907_v53  ;;  %v793_v5 = vadd.f32 %v761_v38, %v1836_v28  ;;  %v746_v4 = vmul.f32 0.6931472, %v1365_v55  ;;  %v861_v49 = vadd.f32 %v853_v54, %v725_v34  ;;  %1378 = vrcp.f32 %v824_v3  ;;  %v424_v51 = vld [vmem:[%s1688_s15 + $0x10] sm:$0xff] }
 0x1d3   : > { %v1369_v6 = vpop.eup %1368  ;;  %v849_v26 = vmul.f32 %v1367_v1, %v1767_v13  ;;  %1380 = vlog2.f32 %v771_v0  ;;  %v784_v13 = vadd.f32 1.0, %v783_v41  ;;  %v786_v60 = vand.u32 2147483647, %v1870_v22 }
 0x1d4   : > { %v881_v10 = vadd.f32 %v873_v62, %v793_v5  ;;  %v1904_v11 = vsel %vm751_vm7, %v749_v15, %v746_v4  ;;  %v902_v12 = vadd.f32 %v894_v63, %v861_v49  ;;  %v823_v14 = vadd.f32 1.0, %v1369_v6  ;;  %v1906_v16 = vpop.eup %1370  ;;  %v897_v15 = vld [vmem:[#allocation3 + $0x18] sm:$0xff]  ;;  %v875_v63 = vld [vmem:[#allocation2 + $0x30] sm:$0xff] }
 0x1d5   : > { %v792_v28 = vadd.f32 %v1904_v11, %v680_v8  ;;  %v857_v17 = vsub.f32 %v665_v7, %v849_v26  ;;  %v1373_v18 = vpop.eup %1372  ;;  %v735_v21 = vadd.f32 1.0, %v1906_v16  ;;  %v667_v34 = vmax.f32 %v1796_v52, 0.0 }
 0x1d6   : > { %890 = vst.msk [vmem:[#allocation2 + $0x20] sm:$0xff] %vm885_vm2, %v881_v10  ;;  %910 = vst.msk [vmem:[#allocation3] sm:$0xff] %vm885_vm2, %v902_v12  ;;  %1382 = vrcp.f32 %v823_v14  ;;  %v1375_v56 = vpop.eup %1374  ;;  %v828_v25 = vadd.f32 1.0, %v1373_v18  ;;  %v785_v36 = vmul.f32 %v1870_v22, %v784_v13  ;;  %v675_v57 = vmul.f32 %v1796_v52, %v428_v44 }
 0x1d7   : > { %v880_v58 = vadd.f32 %v872_v61, %v792_v28  ;;  %v865_v24 = vadd.f32 %v857_v17, %v761_v38  ;;  %1384 = vlog2.f32 %v735_v21  ;;  %v827_v27 = vadd.f32 1.0, %v1375_v56 }
 0x1d8   : > { %1386 = vrcp.f32 %v828_v25  ;;  %v775_v37 = vadd.f32 1.0, %v774_v31  ;;  %v684_v40 = vsub.f32 %v668_v32, %v676_v2  ;;  %vm787_vm8 = vcmp.lt.f32.partialorder %v786_v60, 0.0004427343 }
 0x1d9   : > { %889 = vst.msk [vmem:[#allocation2 + $0x18] sm:$0xff] %vm885_vm2, %v880_v58  ;;  %v906_v7 = vadd.f32 %v898_v19, %v865_v24  ;;  %1388 = vrcp.f32 %v827_v27  ;;  %v777_v59 = vand.u32 2147483647, %v1889_v50  ;;  %v738_v39 = vmul.f32 -0.5, %v1906_v16  ;;  %v901_v58 = vld [vmem:[#allocation3 + $0x38] sm:$0xff]  ;;  %v900_v27 = vld [vmem:[#allocation3 + $0x30] sm:$0xff] }
 0x1da   : > { %v683_v53 = vsub.f32 %v667_v34, %v675_v57  ;;  %v776_v22 = vmul.f32 %v1889_v50, %v775_v37  ;;  %v663_v1 = vmax.f32 %v1819_v9, 0.0  ;;  %v671_v5 = vmul.f32 %v1819_v9, %v424_v51 }
 0x1db   : > { %914 = vst.msk [vmem:[#allocation3 + $0x20] sm:$0xff] %vm885_vm2, %v906_v7  ;;  %vm778_vm9 = vcmp.lt.f32.partialorder %v777_v59, 0.0004427343  ;;  %v739_v62 = vadd.f32 1.0, %v738_v39  ;;  %v741_v4 = vand.u32 2147483647, %v1906_v16 }
 0x1dc   : > { %v1377_v33 = vpop.eup %1376  ;;  %v679_v14 = vsub.f32 %v663_v1, %v671_v5 }
 0x1dd   : > { %v782_v35 = vmul.f32 0.6931472, %v1377_v33  ;;  %v740_v61 = vmul.f32 %v1906_v16, %v739_v62  ;;  %vm742_vm10 = vcmp.lt.f32.partialorder %v741_v4, 0.0004427343 }
 0x1df   : > { %v1379_v42 = vpop.eup %1378  ;;  %v788_v45 = vsel %vm787_vm8, %v785_v36, %v782_v35 }
 0x1e0   : > { %v1381_v46 = vpop.eup %1380  ;;  %v796_v47 = vadd.f32 %v788_v45, %v684_v40  ;;  %v848_v48 = vmul.f32 %v1379_v42, %v1771_v20 }
 0x1e1   : > { %v773_v54 = vmul.f32 0.6931472, %v1381_v46 }
 0x1e2   : > { %v884_v3 = vadd.f32 %v876_v43, %v796_v47  ;;  %v856_v55 = vsub.f32 %v664_v30, %v848_v48 }
 0x1e3   : > { %v1383_v38 = vpop.eup %1382  ;;  %v779_v0 = vsel %vm778_vm9, %v776_v22, %v773_v54 }
 0x1e4   : > { %893 = vst.msk [vmem:[#allocation2 + $0x38] sm:$0xff] %vm885_vm2, %v884_v3  ;;  %v864_v50 = vadd.f32 %v856_v55, %v1904_v11  ;;  %v795_v49 = vadd.f32 %v779_v0, %v683_v53  ;;  %v847_v20 = vmul.f32 %v1383_v38, %v1819_v9  ;;  %v1385_v30 = vpop.eup %1384  ;;  %v871_v11 = vld [vmem:[#allocation2 + $0x10] sm:$0xff] }
 0x1e5   : > { %v1387_v6 = vpop.eup %1386  ;;  %v737_v10 = vmul.f32 0.6931472, %v1385_v30  ;;  %v896_v9 = vld [vmem:[#allocation3 + $0x10] sm:$0xff] }
 0x1e6   : > { %v905_v8 = vadd.f32 %v897_v15, %v864_v50  ;;  %v883_v26 = vadd.f32 %v875_v63, %v795_v49  ;;  %v1389_v12 = vpop.eup %1388  ;;  %v855_v28 = vsub.f32 %v663_v1, %v847_v20  ;;  %v852_v41 = vmul.f32 %v1387_v6, %v1776_v29 }
 0x1e7   : > { %v743_v17 = vsel %vm742_vm10, %v740_v61, %v737_v10  ;;  %v851_v18 = vmul.f32 %v1389_v12, %v1796_v52 }
 0x1e8   : > { %913 = vst.msk [vmem:[#allocation3 + $0x18] sm:$0xff] %vm885_vm2, %v905_v8  ;;  %892 = vst.msk [vmem:[#allocation2 + $0x30] sm:$0xff] %vm885_vm2, %v883_v26  ;;  %v791_v19 = vadd.f32 %v743_v17, %v679_v14  ;;  %v863_v21 = vadd.f32 %v855_v28, %v743_v17  ;;  %v860_v56 = vsub.f32 %v668_v32, %v852_v41 }
 0x1e9   : > { %v859_v16 = vsub.f32 %v667_v34, %v851_v18 }
 0x1ea   : > { %v879_v23 = vadd.f32 %v871_v11, %v791_v19  ;;  %v904_v24 = vadd.f32 %v896_v9, %v863_v21  ;;  %v868_v25 = vadd.f32 %v860_v56, %v788_v45 }
 0x1eb   : > { %v867_v13 = vadd.f32 %v859_v16, %v779_v0  ;;  %921 = sbr.rel (%p1190_p11) target bundleno = 654 (0x28e), region = 60 }
 0x1ec   : > { %888 = vst.msk [vmem:[#allocation2 + $0x10] sm:$0xff] %vm885_vm2, %v879_v23  ;;  %912 = vst.msk [vmem:[#allocation3 + $0x10] sm:$0xff] %vm885_vm2, %v904_v24  ;;  %v909_v29 = vadd.f32 %v901_v58, %v868_v25 }
 0x1ed   : > { %v908_v7 = vadd.f32 %v900_v27, %v867_v13 }
 0x1ee   : > { %917 = vst.msk [vmem:[#allocation3 + $0x38] sm:$0xff] %vm885_vm2, %v909_v29 }
 0x1ef   : > { %916 = vst.msk [vmem:[#allocation3 + $0x30] sm:$0xff] %vm885_vm2, %v908_v7 }
 0x1f0   : > { %v922_v52 = vld [vmem:[#allocation2] sm:$0xff]  ;;  %v923_v31 = vld [vmem:[#allocation2 + $0x8] sm:$0xff]  ;;  %v1536_v2 = vmov 0   ;;  %v925_v60 = vld [vmem:[#allocation2 + $0x18] sm:$0xff] }
 0x1f1   : > { %1390 = vset.pattern.permute.xlu0 %v1536_v2  ;;  %v930_v44 = vsel %vm885_vm2, %v922_v52, 0.0  ;;  %v931_v33 = vsel %vm885_vm2, %v923_v31, 0.0  ;;  %v926_v35 = vld [vmem:[#allocation2 + $0x20] sm:$0xff]  ;;  %v935_v37 = vsel %vm885_vm2, %v925_v60, 0.0  ;;  %v958_v40 = vld [vmem:[#allocation3 + $0x8] sm:$0xff]  ;;  %v960_v39 = vld [vmem:[#allocation3 + $0x18] sm:$0xff] }
 0x1f2   : > { %v932_v36 = vadd.f32 %v931_v33, %v930_v44  ;;  %v957_v57 = vld [vmem:[#allocation3] sm:$0xff]  ;;  %v927_v43 = vld [vmem:[#allocation2 + $0x28] sm:$0xff]  ;;  %v966_v46 = vsel %vm885_vm2, %v958_v40, 0.0  ;;  %v937_v48 = vsel %vm885_vm2, %v926_v35, 0.0  ;;  %v928_v54 = vld [vmem:[#allocation2 + $0x30] sm:$0xff]  ;;  %v970_v3 = vsel %vm885_vm2, %v960_v39, 0.0 }
 0x1f3   : > { %v924_v32 = vld [vmem:[#allocation2 + $0x10] sm:$0xff]  ;;  %v965_v42 = vsel %vm885_vm2, %v957_v57, 0.0  ;;  %v961_v51 = vld [vmem:[#allocation3 + $0x20] sm:$0xff]  ;;  %v939_v55 = vsel %vm885_vm2, %v927_v43, 0.0  ;;  %v962_v62 = vld [vmem:[#allocation3 + $0x28] sm:$0xff]  ;;  %v941_v1 = vsel %vm885_vm2, %v928_v54, 0.0 }
 0x1f4   : > { %v933_v34 = vsel %vm885_vm2, %v924_v32, 0.0  ;;  %v959_v59 = vld [vmem:[#allocation3 + $0x10] sm:$0xff]  ;;  %v967_v53 = vadd.f32 %v966_v46, %v965_v42  ;;  %v929_v15 = vld [vmem:[#allocation2 + $0x38] sm:$0xff]  ;;  %v972_v0 = vsel %vm885_vm2, %v961_v51, 0.0  ;;  %v974_v49 = vsel %vm885_vm2, %v962_v62, 0.0 }
 0x1f5   : > { %v934_v45 = vadd.f32 %v933_v34, %v932_v36  ;;  %v968_v47 = vsel %vm885_vm2, %v959_v59, 0.0  ;;  %v943_v20 = vsel %vm885_vm2, %v929_v15, 0.0  ;;  %v964_v30 = vld [vmem:[#allocation3 + $0x38] sm:$0xff] }
 0x1f6   : > { %v969_v38 = vadd.f32 %v968_v47, %v967_v53  ;;  %v963_v5 = vld [vmem:[#allocation3 + $0x30] sm:$0xff]  ;;  %v978_v12 = vsel %vm885_vm2, %v964_v30, 0.0 }
 0x1f7   : > { %v936_v22 = vadd.f32 %v935_v37, %v934_v45  ;;  %v976_v26 = vsel %vm885_vm2, %v963_v5, 0.0 }
 0x1f8   : > { %v971_v4 = vadd.f32 %v970_v3, %v969_v38 }
 0x1f9   : > { %v938_v63 = vadd.f32 %v937_v48, %v936_v22 }
 0x1fa   : > { %v973_v6 = vadd.f32 %v972_v0, %v971_v4 }
 0x1fb   : > { %v940_v50 = vadd.f32 %v939_v55, %v938_v63 }
 0x1fc   : > { %v975_v10 = vadd.f32 %v974_v49, %v973_v6 }
 0x1fd   : > { %v942_v8 = vadd.f32 %v941_v1, %v940_v50 }
 0x1fe   : > { %v977_v14 = vadd.f32 %v976_v26, %v975_v10 }
 0x1ff   : > { %v944_v61 = vadd.f32 %v943_v20, %v942_v8 }
 0x200   : > { %v979_v41 = vadd.f32 %v978_v12, %v977_v14 }
 0x201   : > { %v945_v28 = vrot.slane %v944_v61, 4 }
 0x202   : > { %v980_v17 = vrot.slane %v979_v41, 4 }
 0x203   : > { %v946_v11 = vadd.f32 %v945_v28, %v944_v61 }
 0x204   : > { %v981_v18 = vadd.f32 %v980_v17, %v979_v41 }
 0x205   : > { %v947_v9 = vrot.slane %v946_v11, 2 }
 0x206   : > { %v982_v21 = vrot.slane %v981_v18, 2 }
 0x207   : > { %v948_v19 = vadd.f32 %v947_v9, %v946_v11 }
 0x208   : > { %v983_v58 = vadd.f32 %v982_v21, %v981_v18 }
 0x209   : > { %v949_v56 = vrot.slane %v948_v19, 1 }
 0x20a   : > { %v984_v23 = vrot.slane %v983_v58, 1 }
 0x20b   : > { %v950_v16 = vadd.f32 %v949_v56, %v948_v19 }
 0x20c   : > { %v985_v24 = vadd.f32 %v984_v23, %v983_v58 }
 0x20d   : > { %953 = vperm.xlu0 %1390, %v950_v16  }
 0x211   : > { %988 = vperm.xlu0 %1390, %v985_v24  }
 0x288   : > { %v954_v25 = vpop.permute.xlu0 %953 }
 0x289   : > { %956 = vst [vmem:[%s1690_s11] sm:$0xff] %v954_v25 }
 0x28c   : > { %v989_v27 = vpop.permute.xlu0 %988 }
 0x28d   : > { %991 = vst [vmem:[%s1692_s10] sm:$0xff] %v989_v27 }
 0x28e PF: > { %s2046_s30 = sshll.u32 %s1520_s9, 7  ;;  %s1011_s22 = sshll.u32 %s1690_s11, 4  ;;  %s1012_s22 = int_to_ptr.vmem [resolvable:$true] %s1011_s22 }
 0x28f   : > { %s1009_s13 = scalar_lea.hbm %s2041_s7, %s2046_s30  ;;  %s993_s16 = scalar_lea.sflag [#allocation5], %s1675_s17 }
 0x290   : > { %s1406_s21 = scalar_lea.vmem %s1012_s22, 128  ;;  %s1537_s23 = smov [#allocation7]  }
 0x291   : > { %p1407_p12 = scmp.ne.s32.totalorder %s1012_s22, %s1406_s21  ;;  %s1410_s6 = sshll.u32 %s1537_s23, 4  ;;  %s1411_s6 = int_to_ptr.vmem [resolvable:$false] %s1410_s6 }
 0x292   : > { %s1412_s24 = scalar_lea.vmem %s1411_s6, 256  ;;  %p1413_p1 = scmp.lt.s32.totalorder %s1012_s22, %s1411_s6 }
 0x293   : > { %p1408_p13 = pnand %p1407_p12, %p1634_p3  ;;  %p1414_p2 = scmp.lt.s32.totalorder %s1412_s24, %s1406_s21 }
 0x295   : > { %p1409_p0 = pneg %p1408_p13  ;;  %p1415_p4 = por %p1414_p2, %p1413_p1 }
 0x297   : > { %p1416_p5 = pnand %p1415_p4, %p1409_p0 }
 0x299   : > { %1419 = shalt.err (!%p1416_p5)
}
 0x29a   : > { %s1420_s25 = scalar_lea.hbm %s1009_s13, 128  ;;  %s1424_s15 = scalar_lea.hbm %s2041_s7, 256 }
 0x29b   : > { %p1421_p6 = scmp.ne.s32.totalorder %s1009_s13, %s1420_s25  ;;  %p1425_p9 = scmp.lt.s32.totalorder %s1009_s13, %s2041_s7 }
 0x29c   : > { %p1426_p10 = scmp.lt.s32.totalorder %s1424_s15, %s1420_s25 }
 0x29d   : > { %p1422_p7 = pnand %p1421_p6, %p1634_p3 }
 0x29e   : > { %p1427_p11 = por %p1426_p10, %p1425_p9 }
 0x29f   : > { %p1423_p8 = pneg %p1422_p7 }
 0x2a1   : > { %p1428_p12 = pnand %p1427_p11, %p1423_p8 }
 0x2a3   : > { %1431 = shalt.err (!%p1428_p12)
}
 0x2a4   : > { %1241 = dma.vmem_to_hbm [thread:$0]  (%p1634_p3), %s1012_s22, 128, %s1009_s13, %s993_s16  }
 0x2a5   : > { %s2065_s21 = sshll.u32 %s1520_s9, 7  ;;  %s1024_s11 = sshll.u32 %s1692_s10, 4  ;;  %s1025_s11 = int_to_ptr.vmem [resolvable:$true] %s1024_s11 }
 0x2a6   : > { %s1022_s24 = scalar_lea.hbm %s2042_s8, %s2065_s21  ;;  %s998_s30 = scalar_lea.sflag [#allocation9], %s1675_s17 }
 0x2a7   : > { %s1432_s20 = scalar_lea.vmem %s1025_s11, 128  ;;  %s1538_s25 = smov [#allocation8]  }
 0x2a8   : > { %p1433_p13 = scmp.ne.s32.totalorder %s1025_s11, %s1432_s20  ;;  %s1436_s15 = sshll.u32 %s1538_s25, 4  ;;  %s1437_s15 = int_to_ptr.vmem [resolvable:$false] %s1436_s15 }
 0x2a9   : > { %s1438_s14 = scalar_lea.vmem %s1437_s15, 256  ;;  %p1439_p2 = scmp.lt.s32.totalorder %s1025_s11, %s1437_s15 }
 0x2aa   : > { %p1434_p0 = pnand %p1433_p13, %p1634_p3  ;;  %p1440_p4 = scmp.lt.s32.totalorder %s1438_s14, %s1432_s20 }
 0x2ac   : > { %p1435_p1 = pneg %p1434_p0  ;;  %p1441_p5 = por %p1440_p4, %p1439_p2 }
 0x2ae   : > { %p1442_p6 = pnand %p1441_p5, %p1435_p1 }
 0x2b0   : > { %1445 = shalt.err (!%p1442_p6)
}
 0x2b1   : > { %s1446_s9 = scalar_lea.hbm %s1022_s24, 128  ;;  %s1450_s13 = scalar_lea.hbm %s2042_s8, 256 }
 0x2b2   : > { %p1447_p7 = scmp.ne.s32.totalorder %s1022_s24, %s1446_s9  ;;  %p1451_p10 = scmp.lt.s32.totalorder %s1022_s24, %s2042_s8 }
 0x2b3   : > { %p1452_p11 = scmp.lt.s32.totalorder %s1450_s13, %s1446_s9 }
 0x2b4   : > { %p1448_p8 = pnand %p1447_p7, %p1634_p3 }
 0x2b5   : > { %p1453_p12 = por %p1452_p11, %p1451_p10 }
 0x2b6   : > { %p1449_p9 = pneg %p1448_p8 }
 0x2b8   : > { %p1454_p13 = pnand %p1453_p12, %p1449_p9 }
 0x2ba   : > { %1457 = shalt.err (!%p1454_p13)
}
 0x2bb   : > { %1242 = dma.vmem_to_hbm [thread:$0]  (%p1634_p3), %s1025_s11, 128, %s1022_s24, %s998_s30  }
 0x2bc PF: > { %p1258_p0 = scmp.ge.s32.totalorder %s1532_s12, 2  ;;  %s1036_s21 = sand.u32 1, %s1504_s27  }
 0x2bd   : > { %p2066_p1 = scmp.ne.s32.totalorder %s2053_s19, 0  ;;  %s1037_s23 = scalar_lea.sflag [#allocation5], %s1036_s21 }
 0x2bf   : > { %p1250_p2 = pnand %p1258_p0, %p2066_p1 }
 0x2c1   : > { %p1251_p4 = pneg %p1250_p2 }
 0x2c3   : > { %1495 = dma.done.wait (%p1251_p4), %s1037_s23, 128  }
 0x2c4   : > { %1497 = vsyncadd (%p1251_p4), %s1037_s23, 4294967168  ;;  %s1046_s6 = scalar_lea.sflag [#allocation9], %s1036_s21 }
 0x2c5   : > { %1499 = dma.done.wait (%p1251_p4), %s1046_s6, 128  }
 0x2c6   : > { %1501 = vsyncadd (%p1251_p4), %s1046_s6, 4294967168  ;;  %s26_s12 = sadd.s32 1, %s1532_s12   ;;  %s2067_s30 = sld [smem:[#allocation13_spill]] }
 0x2c7   : > { %p23_p5 = scmp.ge.s32.totalorder %s26_s12, 6   ;;  %s2068_s9 = sld [smem:[#allocation14_spill]] }
 0x2c8   : > { %s2069_s10 = sld [smem:[#allocation15_spill]]  ;;  %s2071_s27 = smov %s1508_s28 }
 0x2c9   : > { %s2070_s11 = sld [smem:[#allocation16_spill]]  ;;  %s2072_s28 = smov %s1512_s29 }
 0x2ca   : > { %s2073_s29 = smov %s1664_s26  ;;  %25 = sbr.rel (!%p23_p5) target bundleno = 10 (0xa), region = 116 }
 0x2cf   :  { %1051 = vsyncpa [#allocation5], 1 }
 0x2d0   :  { %1053 = vsyncpa [#allocation5 + $0x1], 1 }
 0x2d1   :  { %1054 = vsyncpa [#allocation9], 1 }
 0x2d2   :  { %1056 = vsyncpa [#allocation9 + $0x1], 1 }
 0x2d3   :  { %1057 = vsyncpa [#allocation6], 1 }
 0x2d4   :  { %1059 = vsyncpa [#allocation6 + $0x1], 1 }

</bundles_post_ra>
